<compile_context>
chip_gen: v6e
topology: v6e:2x2x1
jax: 0.10.0
libtpu: 0.0.40
codegen_flags: <defaults>
</compile_context>

<pallas_src>
import functools

import jax
import jax.numpy as jnp
import numpy as np
from jax.experimental import pallas as pl
from jax.experimental.pallas import tpu as pltpu

NEG_SLOPE = 0.01  # F.leaky_relu default


def wcompute_kernel(x_ref,
                    w1_ref, b1_ref, w2_ref, b2_ref,
                    w3_ref, b3_ref, w4_ref, b4_ref,
                    wl_ref, bl_ref,
                    out_ref, *, n_nodes, row_tile, count_chunk, kth, feed_dtype):
    N = n_nodes
    ti = row_tile
    x = x_ref[...]                                   # (bt, N, F) f32
    bt = x.shape[0]

    # Row tile of the i (query-node) axis handled by this grid step.
    if ti == N:
        xi = x
    else:
        i0 = pl.multiple_of(pl.program_id(1) * ti, ti)
        xi = x_ref[:, pl.ds(i0, ti), :]              # (bt, ti, F)

    # Pairwise |x_i - x_j|, flattened over leading dims only (layout free) to
    # an MXU-friendly (bt*ti*N, F) slab.  Only the MXU feed is cast; all VPU
    # math and the accumulation stay f32 (v5e has no bf16 VPU/EUP).
    diff = jnp.abs(xi[:, :, None, :] - x[:, None, :, :])
    diff = diff.reshape(bt * ti * N, x.shape[-1]).astype(feed_dtype)

    def layer(h, w_ref, b_ref):
        # 1x1 conv (+ folded eval-mode BatchNorm) + LeakyReLU == channel matmul.
        y = jnp.dot(h.astype(w_ref.dtype), w_ref[...],
                    preferred_element_type=jnp.float32) + b_ref[...]
        return jnp.where(y >= 0, y, NEG_SLOPE * y)

    h = layer(diff, w1_ref, b1_ref)
    h = layer(h, w2_ref, b2_ref)
    h = layer(h, w3_ref, b3_ref)
    h = layer(h, w4_ref, b4_ref)

    # conv2d_last (C -> 1): fused multiply + lane reduction in f32, leaving the
    # score matrix in its natural s[b, i, j] orientation (j on lanes).
    h4 = h.reshape(bt, ti, N, h.shape[-1])
    s = jnp.sum(h4 * wl_ref[...], axis=-1) + bl_ref[...]        # (bt, ti, N)

    # Mask self edges: W_new = W_new - W_id * 1e8 with W_id == identity.
    # TODO(synk): arbitrary (non-identity) W_id masks would need the W_id
    # input restored; the identity case is what the GNN module actually uses.
    row = jax.lax.broadcasted_iota(jnp.int32, (ti, N), 0)
    if ti != N:
        row = row + pl.program_id(1) * ti
    col = jax.lax.broadcasted_iota(jnp.int32, (ti, N), 1)
    s = jnp.where((row == col)[None, :, :], s - 1e8, s)

    # torch.kthvalue(k=kth) along j: the kth-smallest value of a row is the
    # smallest value whose rank count (#elements <= it) is >= kth.  The 'a'
    # axis of the compare is processed in chunks so at most an
    # O(bt*ti*N*count_chunk) slice is live (vs O(bt*ti*N*N)); each chunk's
    # temporaries are dead right after the partial sum so VMEM is reused.
    cnt = jnp.zeros((bt, ti, N), jnp.float32)
    for a0 in range(0, N, count_chunk):
        sa = s[:, :, a0:a0 + count_chunk]                     # (bt, ti, <=chunk)
        cmp = sa[:, :, :, None] <= s[:, :, None, :]           # a on sublanes, j on lanes
        cnt = cnt + jnp.sum(cmp.astype(jnp.float32), axis=2)
    kval = jnp.min(jnp.where(cnt >= kth, s, jnp.inf), axis=-1, keepdims=True)

    # Keep entries >= kth value, push the rest to -1000 (as in the reference).
    masked = jnp.where(s >= kval, s, jnp.float32(-1000.0))

    # Softmax over j (lane axis); the reciprocal runs on the EUP (approx) so it
    # does not add to the VALU load.
    m = jnp.max(masked, axis=-1, keepdims=True)
    e = jnp.exp(masked - m)
    p = e * pl.reciprocal(jnp.sum(e, axis=-1, keepdims=True), approx=True)

    out_ref[...] = p                                  # natural orientation [b, i, j]


# ---------------- generation-aware tiling -----------------------------------

def _tpu_vmem_info():
    """VMEM budget / grid policy per TPU generation.

    v7x TensorCores have 64 MiB VMEM and come in pairs (prefer >= 2 parallel
    grid steps, tighter budget); v5e/v6e have 128 MiB and a single TC (one big
    block amortizes the ~0.35 us/step overhead best)."""
    try:
        cap = int(pltpu.get_tpu_info().vmem_capacity_bytes)
        if cap <= 0:
            raise ValueError(cap)
    except Exception:       # not queryable: be conservative (v7x-like)
        cap = 64 * 1024 * 1024
    limit = max(32 * 1024 * 1024, min(cap - 16 * 1024 * 1024, 100 * 1024 * 1024))
    budget = limit // 2     # headroom for double buffers / compiler temporaries
    prefer_multi_step = cap < 100 * 1024 * 1024      # v7x-class: 2 TensorCores
    return budget, limit, prefer_multi_step


def _choose_tiles(B, N, F, c_max, ca, budget, prefer_multi_step):
    """Pick (batch_tile, row_tile): the biggest block that fits the VMEM budget;
    on two-core parts additionally insist on >= 2 grid steps when possible."""
    def live_bytes(bt, ti):
        rows = bt * ti * N
        body = rows * (F + 2 * c_max + ca + 8) * 4      # diff slab, h slabs, rank chunk, score temps
        io = 2 * bt * N * F * 4 + 2 * bt * ti * N * 4   # double-buffered x / out blocks
        return body + io

    # Row tiles must be the full N or a multiple of 8 dividing N ((8,128) rule).
    ti_cands = [N] + [t for t in range(((N - 1) // 8) * 8, 7, -8) if N % t == 0]
    bt_cands = sorted((d for d in range(1, B + 1) if B % d == 0), reverse=True)
    can_multi = B >= 2 or any(N // t >= 2 for t in ti_cands)
    for ti in ti_cands:
        for bt in bt_cands:
            if live_bytes(bt, ti) > budget:
                continue
            if prefer_multi_step and can_multi and (B // bt) * (N // ti) < 2:
                continue
            return bt, ti
    return 1, ti_cands[-1]


# ---------------- wrapper ----------------------------------------------------

def wcompute_forward(x, w_id, params, *, matmul_dtype=jnp.float32,
                     count_chunk=None):
    """x: (B, N, F) f32, w_id: (B, N, N, 1) f32.  Returns (B, N, N, 2) ('J2').

    matmul_dtype=jnp.bfloat16 feeds the MXU in bf16 (f32 accumulation), halving
    the pairwise-slab VMEM/bandwidth; validate against the caller's tolerance
    before enabling (kth-value ties may flip under bf16 rounding).
    """
    B, N, F = x.shape
    kth = float(int(N * 0.5))                        # mvalue in the reference
    ca = int(count_chunk) if count_chunk else min(N, 128)

    chans = [p.shape[1] for p in params[0:8:2]]      # conv output widths
    c_max = max([F] + chans)

    budget, vmem_limit, prefer_multi = _tpu_vmem_info()
    bt, ti = _choose_tiles(B, N, F, c_max, ca, budget, prefer_multi)
    grid = (B // bt, N // ti)

    # Cast the four MXU-fed conv weights to the feed dtype; biases and the last
    # layer stay f32 so the scores keep full precision.  The last-layer weight
    # is used as a (1, C) lane-broadcast row inside the kernel.
    kparams = []
    for li in range(4):
        kparams.append(params[2 * li].astype(matmul_dtype))
        kparams.append(params[2 * li + 1])
    kparams += [jnp.transpose(params[8]), params[9]]

    kernel = functools.partial(wcompute_kernel, n_nodes=N, row_tile=ti,
                               count_chunk=ca, kth=kth, feed_dtype=matmul_dtype)

    # Constant-index parameter blocks: Pallas skips their re-DMA after the
    # first grid step (block index never changes); the only residual cost is
    # one spare (tiny) buffer each.
    param_specs = [pl.BlockSpec(p.shape, lambda g, it: (0, 0)) for p in kparams]

    p_out = pl.pallas_call(
        kernel,
        out_shape=jax.ShapeDtypeStruct((B, N, N), jnp.float32),
        grid_spec=pltpu.PrefetchScalarGridSpec(
            num_scalar_prefetch=0,
            grid=grid,
            in_specs=[pl.BlockSpec((bt, N, F), lambda g, it: (g, 0, 0))]
                     + param_specs,
            out_specs=pl.BlockSpec((bt, ti, N), lambda g, it: (g, it, 0)),
        ),
        compiler_params=pltpu.CompilerParams(
            dimension_semantics=("parallel", "parallel"),
            vmem_limit_bytes=vmem_limit),
    )(x, *kparams)

    # operator='J2': channel 0 = W_id, channel 1 = the softmaxed adjacency.
    # TODO(synk): a consumer that accepts channel-first (B, 2, N, N) could take
    # the kernel output directly and skip this lane-sparse concat.
    return jnp.concatenate([w_id, p_out[..., None]], axis=3)


# ---------------- deterministic parameter construction ----------------------

def make_params(input_features, nf, ratio=(2, 2, 1, 1), seed=0):
    """Conv(1x1)+BatchNorm (eval mode) folded into (in,out) weight + (1,out) bias."""
    key = jax.random.PRNGKey(seed)
    chans = [input_features, nf * ratio[0], nf * ratio[1], nf * ratio[2],
             nf * ratio[3]]
    params = []
    eps = 1e-5
    for li in range(4):
        cin, cout = chans[li], chans[li + 1]
        key, kw, kb, kg, kbt = jax.random.split(key, 5)
        w = jax.random.normal(kw, (cin, cout), jnp.float32) / np.sqrt(cin)
        b = 0.1 * jax.random.normal(kb, (1, cout), jnp.float32)
        gamma = 1.0 + 0.1 * jax.random.normal(kg, (cout,), jnp.float32)
        beta = 0.1 * jax.random.normal(kbt, (cout,), jnp.float32)
        mean = jnp.zeros((cout,), jnp.float32)
        var = jnp.ones((cout,), jnp.float32)
        scale = gamma / jnp.sqrt(var + eps)
        w = w * scale[None, :]
        b = b * scale[None, :] + (beta - mean * scale)[None, :]
        params += [w, b]
    # conv2d_last: nf -> num_operators (=1), no BN
    key, kw, kb = jax.random.split(key, 3)
    wl = jax.random.normal(kw, (nf * ratio[3], 1), jnp.float32) / np.sqrt(nf)
    bl = 0.1 * jax.random.normal(kb, (1, 1), jnp.float32)
    params += [wl, bl]
    return params


# ---------------- pure-JAX reference (mirrors the PyTorch forward) ----------

def wcompute_reference(x, w_id, params):
    w1, b1, w2, b2, w3, b3, w4, b4, wl, bl = params
    B, N, F = x.shape
    hp = jax.lax.Precision.HIGHEST

    diff = jnp.abs(x[:, :, None, :] - x[:, None, :, :])          # (B, N, N, F)

    def conv_lrelu(h, w, b):
        y = jnp.einsum('bijf,fc->bijc', h, w, precision=hp) + b[0]
        return jnp.where(y >= 0, y, NEG_SLOPE * y)

    h = conv_lrelu(diff, w1, b1)
    h = conv_lrelu(h, w2, b2)
    h = conv_lrelu(h, w3, b3)
    h = conv_lrelu(h, w4, b4)
    s = jnp.einsum('bijc,co->bijo', h, wl, precision=hp) + bl[0]  # (B, N, N, 1)
    s = (s - w_id * 1e8)[..., 0]                                  # (B, N, N)

    k = int(N * 0.5)
    kval = jnp.sort(s, axis=2)[:, :, k - 1]                       # kth smallest
    keep = s >= kval[:, :, None]
    masked = jnp.where(keep, s, -1000.0)
    p = jax.nn.softmax(masked, axis=2)
    return jnp.concatenate([w_id, p[..., None]], axis=3)


# ---------------------------------------------------------------------------

if __name__ == "__main__":
    B, N, F_in, NF = 2, 8, 32, 16

    key = jax.random.PRNGKey(0)
    kx, kx2 = jax.random.split(key)
    x = jax.random.normal(kx, (B, N, F_in), jnp.float32)
    w_id = jnp.broadcast_to(
        jnp.eye(N, dtype=jnp.float32)[None, :, :, None], (B, N, N, 1))
    params = make_params(F_in, NF, ratio=(2, 2, 1, 1), seed=0)

    # f32 MXU feeds: strict check against the pure-JAX reference.
    out = jax.block_until_ready(wcompute_forward(x, w_id, params))
    ref = wcompute_reference(x, w_id, params)
    np.testing.assert_allclose(np.asarray(out), np.asarray(ref),
                               rtol=1e-2, atol=5e-3)
    assert out.shape == (B, N, N, 2)

    # Exercise the chunked rank-count path (count_chunk < N, with a remainder).
    N2 = 12
    x2 = jax.random.normal(kx2, (B, N2, F_in), jnp.float32)
    w_id2 = jnp.broadcast_to(
        jnp.eye(N2, dtype=jnp.float32)[None, :, :, None], (B, N2, N2, 1))
    out2 = jax.block_until_ready(
        wcompute_forward(x2, w_id2, params, count_chunk=8))
    ref2 = wcompute_reference(x2, w_id2, params)
    np.testing.assert_allclose(np.asarray(out2), np.asarray(ref2),
                               rtol=1e-2, atol=5e-3)

    # bf16 MXU-feed variant (perf option): structural sanity only -- softmax
    # rows must sum to 1 (exact agreement with the f32 reference depends on the
    # caller's tolerance, since kth-value ties can flip under bf16 rounding).
    out_bf = jax.block_until_ready(
        wcompute_forward(x, w_id, params, matmul_dtype=jnp.bfloat16))
    assert np.all(np.isfinite(np.asarray(out_bf)))
    np.testing.assert_allclose(np.asarray(out_bf[..., 1].sum(axis=-1)), 1.0,
                               rtol=2e-2, atol=2e-2)

    print("KERNEL_OK")
</pallas_src>

<mosaic_0001>
module attributes {stable_mosaic.version = 11 : i64} {
  func.func @wcompute_kernel(%arg0: i32, %arg1: i32, %arg2: memref<1x8x32xf32, #tpu.memory_space<vmem>>, %arg3: memref<32x32xf32, #tpu.memory_space<vmem>>, %arg4: memref<1x32xf32, #tpu.memory_space<vmem>>, %arg5: memref<32x32xf32, #tpu.memory_space<vmem>>, %arg6: memref<1x32xf32, #tpu.memory_space<vmem>>, %arg7: memref<32x16xf32, #tpu.memory_space<vmem>>, %arg8: memref<1x16xf32, #tpu.memory_space<vmem>>, %arg9: memref<16x16xf32, #tpu.memory_space<vmem>>, %arg10: memref<1x16xf32, #tpu.memory_space<vmem>>, %arg11: memref<1x16xf32, #tpu.memory_space<vmem>>, %arg12: memref<1x1xf32, #tpu.memory_space<vmem>>, %arg13: memref<1x8x8xf32, #tpu.memory_space<vmem>>) attributes {dimension_semantics = [#tpu.dimension_semantics<parallel>, #tpu.dimension_semantics<parallel>], iteration_bounds = array<i64: 2, 1>, scalar_prefetch = 0 : i64, scratch_operands = 0 : i64, tpu.core_type = #tpu.core_type<tc>, window_params = [{transform_indices = @transform_0, window_bounds = array<i64: 1, 8, 32>}, {pipeline_mode = #tpu.pipeline_mode<synchronous>, transform_indices = @transform_1, window_bounds = array<i64: 32, 32>}, {pipeline_mode = #tpu.pipeline_mode<synchronous>, transform_indices = @transform_2, window_bounds = array<i64: 1, 32>}, {pipeline_mode = #tpu.pipeline_mode<synchronous>, transform_indices = @transform_3, window_bounds = array<i64: 32, 32>}, {pipeline_mode = #tpu.pipeline_mode<synchronous>, transform_indices = @transform_4, window_bounds = array<i64: 1, 32>}, {pipeline_mode = #tpu.pipeline_mode<synchronous>, transform_indices = @transform_5, window_bounds = array<i64: 32, 16>}, {pipeline_mode = #tpu.pipeline_mode<synchronous>, transform_indices = @transform_6, window_bounds = array<i64: 1, 16>}, {pipeline_mode = #tpu.pipeline_mode<synchronous>, transform_indices = @transform_7, window_bounds = array<i64: 16, 16>}, {pipeline_mode = #tpu.pipeline_mode<synchronous>, transform_indices = @transform_8, window_bounds = array<i64: 1, 16>}, {pipeline_mode = #tpu.pipeline_mode<synchronous>, transform_indices = @transform_9, window_bounds = array<i64: 1, 16>}, {pipeline_mode = #tpu.pipeline_mode<synchronous>, transform_indices = @transform_10, window_bounds = array<i64: 1, 1>}, {transform_indices = @transform_11, window_bounds = array<i64: 1, 8, 8>}]} {
    %c0 = arith.constant 0 : index
    %c0_0 = arith.constant 0 : index
    %c0_1 = arith.constant 0 : index
    %0 = vector.load %arg2[%c0, %c0_0, %c0_1] : memref<1x8x32xf32, #tpu.memory_space<vmem>>, vector<1x8x32xf32>
    %1 = vector.shape_cast %0 : vector<1x8x32xf32> to vector<1x8x1x32xf32>
    %2 = vector.shape_cast %0 : vector<1x8x32xf32> to vector<1x1x8x32xf32>
    %3 = vector.broadcast %1 : vector<1x8x1x32xf32> to vector<1x8x8x32xf32>
    %4 = vector.broadcast %2 : vector<1x1x8x32xf32> to vector<1x8x8x32xf32>
    %5 = arith.subf %3, %4 : vector<1x8x8x32xf32>
    %6 = math.absf %5 : vector<1x8x8x32xf32>
    %7 = vector.shape_cast %6 : vector<1x8x8x32xf32> to vector<64x32xf32>
    %c0_2 = arith.constant 0 : index
    %c0_3 = arith.constant 0 : index
    %8 = vector.load %arg3[%c0_2, %c0_3] : memref<32x32xf32, #tpu.memory_space<vmem>>, vector<32x32xf32>
    %cst = arith.constant dense<0.000000e+00> : vector<64x32xf32>
    %9 = tpu.matmul %7, %8, %cst {dimension_numbers = #tpu.dot_dimension_numbers<[1], [0], [0], [1], [0, 0, 1, 1], [], []>} : vector<64x32xf32>, vector<32x32xf32>, vector<64x32xf32> -> vector<64x32xf32>
    %c0_4 = arith.constant 0 : index
    %c0_5 = arith.constant 0 : index
    %10 = vector.load %arg4[%c0_4, %c0_5] : memref<1x32xf32, #tpu.memory_space<vmem>>, vector<1x32xf32>
    %11 = vector.broadcast %10 : vector<1x32xf32> to vector<64x32xf32>
    %12 = arith.addf %9, %11 : vector<64x32xf32>
    %cst_6 = arith.constant 0.000000e+00 : f32
    %13 = vector.broadcast %cst_6 : f32 to vector<64x32xf32>
    %14 = arith.cmpf oge, %12, %13 : vector<64x32xf32>
    %cst_7 = arith.constant 0.00999999977 : f32
    %15 = vector.broadcast %cst_7 : f32 to vector<64x32xf32>
    %16 = arith.mulf %15, %12 : vector<64x32xf32>
    %17 = arith.select %14, %12, %16 : vector<64x32xi1>, vector<64x32xf32>
    %c0_8 = arith.constant 0 : index
    %c0_9 = arith.constant 0 : index
    %18 = vector.load %arg5[%c0_8, %c0_9] : memref<32x32xf32, #tpu.memory_space<vmem>>, vector<32x32xf32>
    %cst_10 = arith.constant dense<0.000000e+00> : vector<64x32xf32>
    %19 = tpu.matmul %17, %18, %cst_10 {dimension_numbers = #tpu.dot_dimension_numbers<[1], [0], [0], [1], [0, 0, 1, 1], [], []>} : vector<64x32xf32>, vector<32x32xf32>, vector<64x32xf32> -> vector<64x32xf32>
    %c0_11 = arith.constant 0 : index
    %c0_12 = arith.constant 0 : index
    %20 = vector.load %arg6[%c0_11, %c0_12] : memref<1x32xf32, #tpu.memory_space<vmem>>, vector<1x32xf32>
    %21 = vector.broadcast %20 : vector<1x32xf32> to vector<64x32xf32>
    %22 = arith.addf %19, %21 : vector<64x32xf32>
    %cst_13 = arith.constant 0.000000e+00 : f32
    %23 = vector.broadcast %cst_13 : f32 to vector<64x32xf32>
    %24 = arith.cmpf oge, %22, %23 : vector<64x32xf32>
    %cst_14 = arith.constant 0.00999999977 : f32
    %25 = vector.broadcast %cst_14 : f32 to vector<64x32xf32>
    %26 = arith.mulf %25, %22 : vector<64x32xf32>
    %27 = arith.select %24, %22, %26 : vector<64x32xi1>, vector<64x32xf32>
    %c0_15 = arith.constant 0 : index
    %c0_16 = arith.constant 0 : index
    %28 = vector.load %arg7[%c0_15, %c0_16] : memref<32x16xf32, #tpu.memory_space<vmem>>, vector<32x16xf32>
    %cst_17 = arith.constant dense<0.000000e+00> : vector<64x16xf32>
    %29 = tpu.matmul %27, %28, %cst_17 {dimension_numbers = #tpu.dot_dimension_numbers<[1], [0], [0], [1], [0, 0, 1, 1], [], []>} : vector<64x32xf32>, vector<32x16xf32>, vector<64x16xf32> -> vector<64x16xf32>
    %c0_18 = arith.constant 0 : index
    %c0_19 = arith.constant 0 : index
    %30 = vector.load %arg8[%c0_18, %c0_19] : memref<1x16xf32, #tpu.memory_space<vmem>>, vector<1x16xf32>
    %31 = vector.broadcast %30 : vector<1x16xf32> to vector<64x16xf32>
    %32 = arith.addf %29, %31 : vector<64x16xf32>
    %cst_20 = arith.constant 0.000000e+00 : f32
    %33 = vector.broadcast %cst_20 : f32 to vector<64x16xf32>
    %34 = arith.cmpf oge, %32, %33 : vector<64x16xf32>
    %cst_21 = arith.constant 0.00999999977 : f32
    %35 = vector.broadcast %cst_21 : f32 to vector<64x16xf32>
    %36 = arith.mulf %35, %32 : vector<64x16xf32>
    %37 = arith.select %34, %32, %36 : vector<64x16xi1>, vector<64x16xf32>
    %c0_22 = arith.constant 0 : index
    %c0_23 = arith.constant 0 : index
    %38 = vector.load %arg9[%c0_22, %c0_23] : memref<16x16xf32, #tpu.memory_space<vmem>>, vector<16x16xf32>
    %cst_24 = arith.constant dense<0.000000e+00> : vector<64x16xf32>
    %39 = tpu.matmul %37, %38, %cst_24 {dimension_numbers = #tpu.dot_dimension_numbers<[1], [0], [0], [1], [0, 0, 1, 1], [], []>} : vector<64x16xf32>, vector<16x16xf32>, vector<64x16xf32> -> vector<64x16xf32>
    %c0_25 = arith.constant 0 : index
    %c0_26 = arith.constant 0 : index
    %40 = vector.load %arg10[%c0_25, %c0_26] : memref<1x16xf32, #tpu.memory_space<vmem>>, vector<1x16xf32>
    %41 = vector.broadcast %40 : vector<1x16xf32> to vector<64x16xf32>
    %42 = arith.addf %39, %41 : vector<64x16xf32>
    %cst_27 = arith.constant 0.000000e+00 : f32
    %43 = vector.broadcast %cst_27 : f32 to vector<64x16xf32>
    %44 = arith.cmpf oge, %42, %43 : vector<64x16xf32>
    %cst_28 = arith.constant 0.00999999977 : f32
    %45 = vector.broadcast %cst_28 : f32 to vector<64x16xf32>
    %46 = arith.mulf %45, %42 : vector<64x16xf32>
    %47 = arith.select %44, %42, %46 : vector<64x16xi1>, vector<64x16xf32>
    %48 = vector.shape_cast %47 : vector<64x16xf32> to vector<1x8x8x16xf32>
    %c0_29 = arith.constant 0 : index
    %c0_30 = arith.constant 0 : index
    %49 = vector.load %arg11[%c0_29, %c0_30] : memref<1x16xf32, #tpu.memory_space<vmem>>, vector<1x16xf32>
    %50 = vector.shape_cast %49 : vector<1x16xf32> to vector<1x1x1x16xf32>
    %51 = vector.broadcast %50 : vector<1x1x1x16xf32> to vector<1x8x8x16xf32>
    %52 = arith.mulf %48, %51 : vector<1x8x8x16xf32>
    %cst_31 = arith.constant dense<0.000000e+00> : vector<1x8x8xf32>
    %53 = vector.multi_reduction <add>, %52, %cst_31 [3] : vector<1x8x8x16xf32> to vector<1x8x8xf32>
    %c0_32 = arith.constant 0 : index
    %c0_33 = arith.constant 0 : index
    %54 = vector.load %arg12[%c0_32, %c0_33] : memref<1x1xf32, #tpu.memory_space<vmem>>, vector<1x1xf32>
    %55 = vector.shape_cast %54 : vector<1x1xf32> to vector<1x1x1xf32>
    %56 = vector.broadcast %55 : vector<1x1x1xf32> to vector<1x8x8xf32>
    %57 = arith.addf %53, %56 : vector<1x8x8xf32>
    %58 = tpu.iota {dimensions = array<i32: 0>} : vector<8x8xi32>
    %59 = tpu.iota {dimensions = array<i32: 1>} : vector<8x8xi32>
    %60 = arith.cmpi eq, %58, %59 : vector<8x8xi32>
    %61 = vector.shape_cast %60 : vector<8x8xi1> to vector<1x8x8xi1>
    %cst_34 = arith.constant 1.000000e+08 : f32
    %62 = vector.broadcast %cst_34 : f32 to vector<1x8x8xf32>
    %63 = arith.subf %57, %62 : vector<1x8x8xf32>
    %64 = arith.select %61, %63, %57 : vector<1x8x8xi1>, vector<1x8x8xf32>
    %cst_35 = arith.constant 0.000000e+00 : f32
    %65 = vector.broadcast %cst_35 : f32 to vector<1x8x8xf32>
    %66 = vector.shape_cast %64 : vector<1x8x8xf32> to vector<1x8x8x1xf32>
    %67 = vector.shape_cast %64 : vector<1x8x8xf32> to vector<1x8x1x8xf32>
    %68 = vector.broadcast %66 : vector<1x8x8x1xf32> to vector<1x8x8x8xf32>
    %69 = vector.broadcast %67 : vector<1x8x1x8xf32> to vector<1x8x8x8xf32>
    %70 = arith.cmpf ole, %68, %69 : vector<1x8x8x8xf32>
    %71 = arith.extui %70 : vector<1x8x8x8xi1> to vector<1x8x8x8xi32>
    %72 = arith.sitofp %71 : vector<1x8x8x8xi32> to vector<1x8x8x8xf32>
    %cst_36 = arith.constant dense<0.000000e+00> : vector<1x8x8xf32>
    %73 = vector.multi_reduction <add>, %72, %cst_36 [2] : vector<1x8x8x8xf32> to vector<1x8x8xf32>
    %74 = arith.addf %65, %73 : vector<1x8x8xf32>
    %cst_37 = arith.constant 4.000000e+00 : f32
    %75 = vector.broadcast %cst_37 : f32 to vector<1x8x8xf32>
    %76 = arith.cmpf oge, %74, %75 : vector<1x8x8xf32>
    %cst_38 = arith.constant 0x7F800000 : f32
    %77 = vector.broadcast %cst_38 : f32 to vector<1x8x8xf32>
    %78 = arith.select %76, %64, %77 : vector<1x8x8xi1>, vector<1x8x8xf32>
    %cst_39 = arith.constant dense<0x7F800000> : vector<1x8xf32>
    %79 = vector.multi_reduction <minimumf>, %78, %cst_39 [2] : vector<1x8x8xf32> to vector<1x8xf32>
    %80 = vector.shape_cast %79 : vector<1x8xf32> to vector<1x8x1xf32>
    %81 = vector.broadcast %80 : vector<1x8x1xf32> to vector<1x8x8xf32>
    %82 = arith.cmpf oge, %64, %81 : vector<1x8x8xf32>
    %cst_40 = arith.constant -1.000000e+03 : f32
    %83 = vector.broadcast %cst_40 : f32 to vector<1x8x8xf32>
    %84 = arith.select %82, %64, %83 : vector<1x8x8xi1>, vector<1x8x8xf32>
    %cst_41 = arith.constant dense<0xFF800000> : vector<1x8xf32>
    %85 = vector.multi_reduction <maximumf>, %84, %cst_41 [2] : vector<1x8x8xf32> to vector<1x8xf32>
    %86 = vector.shape_cast %85 : vector<1x8xf32> to vector<1x8x1xf32>
    %87 = vector.broadcast %86 : vector<1x8x1xf32> to vector<1x8x8xf32>
    %88 = arith.subf %84, %87 : vector<1x8x8xf32>
    %89 = math.exp %88 : vector<1x8x8xf32>
    %cst_42 = arith.constant dense<0.000000e+00> : vector<1x8xf32>
    %90 = vector.multi_reduction <add>, %89, %cst_42 [2] : vector<1x8x8xf32> to vector<1x8xf32>
    %91 = vector.shape_cast %90 : vector<1x8xf32> to vector<1x8x1xf32>
    %92 = tpu.reciprocal %91 {approx = true} : vector<1x8x1xf32> -> vector<1x8x1xf32>
    %93 = vector.broadcast %92 : vector<1x8x1xf32> to vector<1x8x8xf32>
    %94 = arith.mulf %89, %93 : vector<1x8x8xf32>
    %c0_43 = arith.constant 0 : index
    %c0_44 = arith.constant 0 : index
    %c0_45 = arith.constant 0 : index
    %95 = vector.load %arg13[%c0_43, %c0_44, %c0_45] : memref<1x8x8xf32, #tpu.memory_space<vmem>>, vector<1x8x8xf32>
    tpu.vector_store %arg13[%c0_43, %c0_44, %c0_45], %94 {strides = array<i32>} : memref<1x8x8xf32, #tpu.memory_space<vmem>>, vector<1x8x8xf32>,
    return
  }
  func.func @transform_0(%arg0: i32, %arg1: i32) -> (i32, i32, i32) {
    %c0_i32 = arith.constant 0 : i32
    %c0_i32_0 = arith.constant 0 : i32
    %c0_i32_1 = arith.constant 0 : i32
    return %arg0, %c0_i32, %c0_i32_0 : i32, i32, i32
  }
  func.func @transform_1(%arg0: i32, %arg1: i32) -> (i32, i32) {
    %c0_i32 = arith.constant 0 : i32
    %c0_i32_0 = arith.constant 0 : i32
    %c0_i32_1 = arith.constant 0 : i32
    return %c0_i32, %c0_i32_0 : i32, i32
  }
  func.func @transform_2(%arg0: i32, %arg1: i32) -> (i32, i32) {
    %c0_i32 = arith.constant 0 : i32
    %c0_i32_0 = arith.constant 0 : i32
    %c0_i32_1 = arith.constant 0 : i32
    return %c0_i32, %c0_i32_0 : i32, i32
  }
  func.func @transform_3(%arg0: i32, %arg1: i32) -> (i32, i32) {
    %c0_i32 = arith.constant 0 : i32
    %c0_i32_0 = arith.constant 0 : i32
    %c0_i32_1 = arith.constant 0 : i32
    return %c0_i32, %c0_i32_0 : i32, i32
  }
  func.func @transform_4(%arg0: i32, %arg1: i32) -> (i32, i32) {
    %c0_i32 = arith.constant 0 : i32
    %c0_i32_0 = arith.constant 0 : i32
    %c0_i32_1 = arith.constant 0 : i32
    return %c0_i32, %c0_i32_0 : i32, i32
  }
  func.func @transform_5(%arg0: i32, %arg1: i32) -> (i32, i32) {
    %c0_i32 = arith.constant 0 : i32
    %c0_i32_0 = arith.constant 0 : i32
    %c0_i32_1 = arith.constant 0 : i32
    return %c0_i32, %c0_i32_0 : i32, i32
  }
  func.func @transform_6(%arg0: i32, %arg1: i32) -> (i32, i32) {
    %c0_i32 = arith.constant 0 : i32
    %c0_i32_0 = arith.constant 0 : i32
    %c0_i32_1 = arith.constant 0 : i32
    return %c0_i32, %c0_i32_0 : i32, i32
  }
  func.func @transform_7(%arg0: i32, %arg1: i32) -> (i32, i32) {
    %c0_i32 = arith.constant 0 : i32
    %c0_i32_0 = arith.constant 0 : i32
    %c0_i32_1 = arith.constant 0 : i32
    return %c0_i32, %c0_i32_0 : i32, i32
  }
  func.func @transform_8(%arg0: i32, %arg1: i32) -> (i32, i32) {
    %c0_i32 = arith.constant 0 : i32
    %c0_i32_0 = arith.constant 0 : i32
    %c0_i32_1 = arith.constant 0 : i32
    return %c0_i32, %c0_i32_0 : i32, i32
  }
  func.func @transform_9(%arg0: i32, %arg1: i32) -> (i32, i32) {
    %c0_i32 = arith.constant 0 : i32
    %c0_i32_0 = arith.constant 0 : i32
    %c0_i32_1 = arith.constant 0 : i32
    return %c0_i32, %c0_i32_0 : i32, i32
  }
  func.func @transform_10(%arg0: i32, %arg1: i32) -> (i32, i32) {
    %c0_i32 = arith.constant 0 : i32
    %c0_i32_0 = arith.constant 0 : i32
    %c0_i32_1 = arith.constant 0 : i32
    return %c0_i32, %c0_i32_0 : i32, i32
  }
  func.func @transform_11(%arg0: i32, %arg1: i32) -> (i32, i32, i32) {
    %c0_i32 = arith.constant 0 : i32
    %c0_i32_0 = arith.constant 0 : i32
    return %arg0, %arg1, %c0_i32 : i32, i32, i32
  }
}

</mosaic_0001>

<bundles_post_ra>
// kernel: tpu_custom_call.1
= control target key start
LH: loop header
LB: loop body
LE: loop exit
PB: predicated region body
PF: predicated region fallthrough
CT: control target
= control target key end

     0   :  { %s2597_s0 = inlined_call_operand.vmem [shape: f32[2,8,32], index: 0, kind: input, shape index: {}]   ;;  %s2598_s1 = inlined_call_operand.vmem [shape: f32[32,32], index: 1, kind: input, shape index: {}]   ;;  %s2599_s2 = inlined_call_operand.vmem [shape: f32[1,32], index: 2, kind: input, shape index: {}]   ;;  %s2600_s3 = inlined_call_operand.hbm [shape: f32[32,32], index: 3, kind: input, shape index: {}]   ;;  %s2601_s4 = inlined_call_operand.vmem [shape: f32[1,32], index: 4, kind: input, shape index: {}]   ;;  %s2602_s5 = inlined_call_operand.vmem [shape: f32[32,16], index: 5, kind: input, shape index: {}]   ;;  %s2603_s6 = inlined_call_operand.vmem [shape: f32[1,16], index: 6, kind: input, shape index: {}]   ;;  %s2604_s7 = inlined_call_operand.hbm [shape: f32[16,16], index: 7, kind: input, shape index: {}]   ;;  %s2605_s8 = inlined_call_operand.vmem [shape: f32[1,16], index: 8, kind: input, shape index: {}]   ;;  %s2606_s9 = inlined_call_operand.vmem [shape: f32[1,16], index: 9, kind: input, shape index: {}]   ;;  %s2607_s10 = inlined_call_operand.<no memory space> [shape: f32[1,1], index: 10, kind: input, shape index: {}]   ;;  %s2608_s11 = inlined_call_operand.hbm [shape: f32[2,8,8], index: 11, kind: output, shape index: {}]  }
   0x1   :  { %v16_v0 = vstv %s2607_s10 }
   0x2   :  { %17 = vst [vmem:[#allocation2] sm:$0x1] %v16_v0 }
   0x3   :  { %18 = vsyncpa [#allocation4], 0 }
   0x4   :  { %19 = vsyncpa [#allocation7], 0 }
   0x5   :  { %20 = vsyncpa [#allocation5], 0 }
   0x6   :  { %22 = vsyncpa [#allocation5 + $0x1], 0  ;;  %s2263_s19 = smov 0   ;;  %s2265_s20 = smov 0  }
   0x7   :  { %s2267_s21 = smov 0   ;;  %s2269_s22 = smov 0  }
   0x8   :  { %s2271_s23 = smov 0   ;;  %s2273_s24 = smov 0  }
   0x9 LB: > { %2612 = sst [smem:[#allocation12_spill]] %s2186_s23  ;;  %s1776_s10 = sadd.s32 4294967295, %s2190_s24   ;;  %s2190_s24 = sphi %s2273_s24, %s28_s24   ;;  %s2186_s23 = sphi %s2271_s23, %s2622_s23   ;;  %s2182_s22 = sphi %s2269_s22, %s2621_s22   ;;  %s2178_s21 = sphi %s2267_s21, %s2625_s21   ;;  %s2174_s20 = sphi %s2265_s20, %s2624_s20   ;;  %s2170_s19 = sphi %s2263_s19, %s2623_s19  }
   0xa   : > { %s1777_s25 = sadd.s32 4294967294, %s2190_s24   ;;  %s40_s26 = sadd.s32 1, %s2186_s23 }
   0xb   : > { %s285_s27 = sadd.s32 1, %s2178_s21  ;;  %p42_p0 = scmp.ge.s32.totalorder %s40_s26, 2 }
   0xc   : > { %p295_p1 = scmp.ne.s32.totalorder %s2178_s21, %s2174_s20  ;;  %p296_p2 = scmp.eq.s32.totalorder %s1776_s10, 1 }
   0xd   : > { %p301_p3 = scmp.ne.s32.totalorder %s2174_s20, %s2170_s19  ;;  %s2627_s26 = smov (%p42_p0, %s40_s26), 0 }
   0xe   : > { %2613 = sst [smem:[#allocation13_spill]] %s2627_s26  ;;  %p2303_p4 = por %p296_p2, %p295_p1 }
   0xf   : > { %p302_p5 = scmp.eq.s32.totalorder %s1777_s25, 1  ;;  %s280_s29 = ssub.s32 %s2186_s23, %s2627_s26 }
  0x10   : > { %s2614_s28 = scalar_select %p2303_p4, 1, 0 }
  0x11   : > { %p1778_p6 = scmp.ge.s32.totalorder %s2190_s24, 1  ;;  %p283_p7 = scmp.eq.s32.totalorder %s280_s29, 0 }
  0x12   : > { %p2310_p8 = por %p302_p5, %p301_p3  ;;  %p309_p9 = scmp.lt.s32.totalorder %s2190_s24, 3 }
  0x13   : > { %s2316_s12 = scalar_select %p283_p7, %s2178_s21, %s285_s27  }
  0x14   : > { %s2615_s30 = scalar_select %p2310_p8, 1, 0 }
  0x15   : > { %p2318_p10 = pnand %p1778_p6, %p309_p9  ;;  %p2322_p11 = scmp.eq.s32.totalorder %s1776_s10, 0 }
  0x16   : > { %s2192_s15 = smov [#allocation3]   ;;  %s2193_s18 = smov [#allocation6]  }
  0x17   : > { %p1977_p12 = pneg %p2318_p10  ;;  %s327_s16 = sshll.u32 %s2192_s15, 4  ;;  %s328_s16 = int_to_ptr.vmem [resolvable:$true] %s327_s16 }
  0x18   : > { %s349_s25 = sshll.u32 %s2193_s18, 4  ;;  %s2065_s10 = scalar_lea.vmem %s328_s16, 512  ;;  %s350_s25 = int_to_ptr.vmem [resolvable:$true] %s349_s25 }
  0x19   : > { %p2330_p13 = pnand %p2322_p11, %p1977_p12  ;;  %p2066_p1 = scmp.ne.s32.totalorder %s328_s16, %s2065_s10 }
  0x1a   : > { %p2073_p5 = scmp.lt.s32.totalorder %s328_s16, %s328_s16  ;;  %p2074_p6 = scmp.lt.s32.totalorder %s2065_s10, %s2065_s10 }
  0x1b   : > { %p2056_p0 = pneg %p2330_p13 }
  0x1c   : > { %p2075_p7 = por %p2074_p6, %p2073_p5 }
  0x1d   : > { %p2068_p2 = pnand %p2066_p1, %p2056_p0 }
  0x1f   : > { %p2069_p3 = pneg %p2068_p2 }
  0x21   : > { %p2076_p9 = pnand %p2075_p7, %p2069_p3 }
  0x23   : > { %2079 = shalt.err (!%p2076_p9)
}
  0x24   : > { %s2194_s27 = smov 128   ;;  %s2195_s29 = smov 8  }
  0x25   : > { %1980 = dma.hbm_to_vmem [thread:$0]  (!%p2330_p13), %s2600_s3, 512, %s328_s16, [#allocation4], %s2194_s27, %s2194_s27, %s2195_s29  }
  0x26   : > { %s2091_s26 = scalar_lea.vmem %s350_s25, 256  ;;  %p2099_p8 = scmp.lt.s32.totalorder %s350_s25, %s350_s25 }
  0x27   : > { %p2092_p12 = scmp.ne.s32.totalorder %s350_s25, %s2091_s26  ;;  %p2100_p4 = scmp.lt.s32.totalorder %s2091_s26, %s2091_s26 }
  0x29   : > { %p2094_p1 = pnand %p2092_p12, %p2056_p0  ;;  %p2101_p5 = por %p2100_p4, %p2099_p8 }
  0x2b   : > { %p2095_p2 = pneg %p2094_p1 }
  0x2d   : > { %p2102_p3 = pnand %p2101_p5, %p2095_p2 }
  0x2f   : > { %2105 = shalt.err (!%p2102_p3)
}
  0x30   : > { %1983 = dma.hbm_to_vmem [thread:$0]  (!%p2330_p13), %s2604_s7, 256, %s350_s25, [#allocation7], %s2194_s27, %s2194_s27, %s2195_s29  }
  0x31   : > { %381 = sbr.rel (%p2318_p10) target bundleno = 1685 (0x695), region = 64 }
  0x36   : > { %2157 = dma.done.wait (%p2322_p11), [#allocation4], 512  }
  0x37   : > { %2159 = vsyncadd (%p2322_p11), [#allocation4], 4294966784 }
  0x38   : > { %2161 = dma.done.wait (%p2322_p11), [#allocation7], 256  }
  0x39   : > { %2163 = vsyncadd (%p2322_p11), [#allocation7], 4294967040  ;;  %p424_p4 = scmp.lt.s32.totalorder %s2182_s22, 1  ;;  %v434_v1 = vlaneseq  ;;  %v2196_v2 = vmov 1966171168   ;;  %v538_v7 = vld [vmem:[%s2598_s1 + $0x18] sm:$0xff] }
  0x3a   : > { %v432_v3 = vunpack.c.l.s4 %v2196_v2  ;;  %v537_v8 = vld [vmem:[%s2598_s1 + $0x10] sm:$0xff]  ;;  %1891 = vmatprep.subr.mxu0 %v538_v7  ;;  %v536_v10 = vld [vmem:[%s2598_s1 + $0x8] sm:$0xff]  ;;  %v535_v14 = vld [vmem:[%s2598_s1] sm:$0xff]  ;;  %vm546_vm0 = vcmask 261120   ;;  %s421_s27 = sand.u32 1, %s2174_s20   ;;  %s1842_s15 = sshll.u32 %s2182_s22, 7 }
  0x3b   : > { %s425_s23 = scalar_select %p424_p4, %s2182_s22, 1  ;;  %v2365_v4 = vshrl.u32 %v434_v1, 7  ;;  %1892 = vmatpush3.msra.mxu0 %v538_v7  ;;  %v703_v50 = vld [vmem:[#allocation3 + $0x18] sm:$0xff]  ;;  %v702_v51 = vld [vmem:[#allocation3 + $0x10] sm:$0xff]  ;;  %v701_v52 = vld [vmem:[#allocation3 + $0x8] sm:$0xff] }
  0x3c   : > { %v433_v5 = vunpack.c.0.s8 %v432_v3  ;;  %1893 = vmatprep.subr.mxu0 %v537_v8  ;;  %1911 = vmatprep.subr.mxu1 %v703_v50  ;;  %v700_v53 = vld [vmem:[#allocation3] sm:$0xff]  ;;  %v867_v54 = vld [vmem:[%s2602_s5 + $0x18] sm:$0xff]  ;;  %v866_v55 = vld [vmem:[%s2602_s5 + $0x10] sm:$0xff]  ;;  %s1785_s29 = sshll.u32 %s421_s27, 3  ;;  %s1684_s13 = scalar_lea.hbm %s2608_s11, %s1842_s15 }
  0x3d   : > { %s1786_s26 = sshll.u32 %s425_s23, 3  ;;  %v2384_v12 = vsub.s32 0, %v2365_v4  ;;  %1894 = vmatpush3.msra.mxu0 %v537_v8  ;;  %1912 = vmatpush3.msra.mxu1 %v703_v50  ;;  %v1787_v56 = vld [vmem:[%s2599_s2] ss:$0 sm:$0xff]  ;;  %s423_s18 = scalar_lea.vmem [#allocation8], %s1785_s29 }
  0x3e   : > { %s427_s17 = scalar_lea.vmem %s2597_s0, %s1786_s26  ;;  %v2371_v6 = vsub.s32 %v433_v5, %v2365_v4  ;;  %1895 = vmatprep.subr.mxu0 %v536_v10  ;;  %1913 = vmatprep.subr.mxu1 %v702_v51  ;;  %s1686_s10 = sshll.u32 %s423_s18, 4  ;;  %s1687_s10 = int_to_ptr.vmem [resolvable:$true] %s1686_s10 }
  0x3f   : > { %v428_v9 = vld [vmem:[%s427_s17] sm:$0xff]  ;;  %1896 = vmatpush3.msra.mxu0 %v536_v10  ;;  %1914 = vmatpush3.msra.mxu1 %v702_v51  ;;  %s1672_s16 = scalar_lea.sflag [#allocation5], %s421_s27  ;;  %s2106_s17 = scalar_lea.vmem %s1687_s10, 128 }
  0x40   : > { %v437_v11 = vrot.slane %v428_v9, %v2371_v6  ;;  %v430_v13 = vcombine.high %v428_v9, %v428_v9  ;;  %1897 = vmatprep.subr.mxu0 %v535_v14  ;;  %1915 = vmatprep.subr.mxu1 %v701_v52  ;;  %p2107_p8 = scmp.ne.s32.totalorder %s1687_s10, %s2106_s17  ;;  %p2619_p10 = scmp.ne.s32.totalorder %s2614_s28, 0 }
  0x41   : > { %1898 = vmatpush3.msra.mxu0 %v535_v14  ;;  %1916 = vmatpush3.msra.mxu1 %v701_v52  ;;  %s2199_s14 = smov [#allocation8]  }
  0x42   : > { %v445_v15 = vcombine.high %v437_v11, %v437_v11  ;;  %v453_v16 = vrot.slane %v437_v11, %v2371_v6  ;;  %v444_v17 = vrot.slane %v430_v13, %v2371_v6  ;;  %1917 = vmatprep.subr.mxu1 %v700_v53  ;;  %1931 = vmatprep.subr.mxu0 %v867_v54  ;;  %p2108_p11 = pnand %p2107_p8, %p2619_p10  ;;  %s2110_s25 = sshll.u32 %s2199_s14, 4  ;;  %s2111_s25 = int_to_ptr.vmem [resolvable:$false] %s2110_s25 }
  0x43   : > { %1918 = vmatpush3.msra.mxu1 %v700_v53  ;;  %s2112_s22 = scalar_lea.vmem %s2111_s25, 256  ;;  %p2113_p0 = scmp.lt.s32.totalorder %s1687_s10, %s2111_s25 }
  0x44   : > { %v475_v18 = vcombine.high %v453_v16, %v453_v16  ;;  %v482_v19 = vrot.slane %v453_v16, %v2384_v12  ;;  %v467_v20 = vrot.slane %v445_v15, %v2371_v6  ;;  %v460_v21 = vrot.slane %v444_v17, %v2371_v6  ;;  %p2109_p13 = pneg %p2108_p11  ;;  %p2114_p6 = scmp.lt.s32.totalorder %s2112_s22, %s2106_s17 }
  0x45   : > { %v446_v22 = vcombine.high %v444_v17, %v444_v17 }
  0x46   : > { %v519_v23 = vsub.f32 %v482_v19, %v428_v9  ;;  %v486_v24 = vrot.slane %v467_v20, %v2384_v12  ;;  %v490_v25 = vrot.slane %v475_v18, %v2384_v12  ;;  %v477_v26 = vcombine.high %v467_v20, %v467_v20  ;;  %p2115_p7 = por %p2114_p6, %p2113_p0 }
  0x47   : > { %v498_v27 = vrot.slane %v460_v21, %v2384_v12  ;;  %v474_v28 = vrot.slane %v446_v22, %v2371_v6  ;;  %v476_v29 = vcombine.high %v460_v21, %v460_v21 }
  0x48   : > { %v527_v30 = vand.u32 2147483647, %v519_v23  ;;  %v520_v31 = vsub.f32 %v486_v24, %v428_v9  ;;  %v521_v32 = vsub.f32 %v490_v25, %v428_v9  ;;  %v494_v33 = vrot.slane %v477_v26, %v2384_v12  ;;  %p2116_p9 = pnand %p2115_p7, %p2109_p13 }
  0x49   : > { %v523_v34 = vsub.f32 %v498_v27, %v428_v9  ;;  %v502_v35 = vrot.slane %v474_v28, %v2384_v12  ;;  %v506_v36 = vrot.slane %v476_v29, %v2384_v12  ;;  %v478_v37 = vcombine.high %v474_v28, %v474_v28  ;;  %v865_v29 = vld [vmem:[%s2602_s5 + $0x8] sm:$0xff] }
  0x4a   : > { %1899 = vmatprep.mubr.msk.f32.mxu0 %vm546_vm0, %v527_v30  ;;  %v528_v38 = vand.u32 2147483647, %v520_v31  ;;  %v529_v39 = vand.u32 2147483647, %v521_v32  ;;  %v522_v40 = vsub.f32 %v494_v33, %v428_v9  ;;  %v864_v30 = vld [vmem:[%s2602_s5] sm:$0xff]  ;;  %v1029_v31 = vld [vmem:[#allocation6 + $0x8] sm:$0xff] }
  0x4b   : > { %v524_v42 = vsub.f32 %v502_v35, %v428_v9  ;;  %v510_v43 = vrot.slane %v478_v37, %v2384_v12  ;;  %v531_v44 = vand.u32 2147483647, %v523_v34  ;;  %v525_v45 = vsub.f32 %v506_v36, %v428_v9  ;;  %1951 = vmatprep.subr.mxu1 %v1029_v31  ;;  %v1796_v32 = vld [vmem:[%s2601_s4] ss:$0 sm:$0xff] }
  0x4c   : > { %1900 = vmatmul.mubr.msk.f32.vlgmr.msra.gmra.mxu0 %vm546_vm0, %v528_v38  ;;  %v530_v41 = vand.u32 2147483647, %v522_v40 }
  0x4d   : > { %1902 = vmatprep.mubr.msk.f32.mxu0 %vm546_vm0, %v529_v39  ;;  %v532_v46 = vand.u32 2147483647, %v524_v42  ;;  %v526_v47 = vsub.f32 %v510_v43, %v428_v9  ;;  %v533_v48 = vand.u32 2147483647, %v525_v45  ;;  %1932 = vmatpush3.msra.mxu0 %v867_v54 }
  0x4e   : > { %1933 = vmatprep.subr.mxu0 %v866_v55 }
  0x4f   : > { %v534_v49 = vand.u32 2147483647, %v526_v47  ;;  %1934 = vmatpush3.msra.mxu0 %v866_v55 }
  0x50   : > { %1903 = vmatmul.mubr.msk.f32.gmra.mxu0 %vm546_vm0, %v530_v41  ;;  %1935 = vmatprep.subr.mxu0 %v865_v29 }
  0x51   : > { %1905 = vmatprep.mubr.msk.f32.mxu0 %vm546_vm0, %v531_v44  ;;  %1936 = vmatpush3.msra.mxu0 %v865_v29 }
  0x52   : > { %1937 = vmatprep.subr.mxu0 %v864_v30 }
  0x53   : > { %1938 = vmatpush3.msra.mxu0 %v864_v30 }
  0x54   : > { %1906 = vmatmul.mubr.msk.f32.gmra.mxu0 %vm546_vm0, %v532_v46 }
  0x55   : > { %1908 = vmatprep.mubr.msk.f32.mxu0 %vm546_vm0, %v533_v48 }
  0x58   : > { %1909 = vmatmul.mubr.msk.f32.gmra.mxu0 %vm546_vm0, %v534_v49 }
 0x10c   : > { %v1901_v57 = vpop.f32.mrf.mxu0 }
 0x10d   : > { %v643_v58 = vadd.f32 %v1901_v57, %v1787_v56 }
 0x10e   : > { %v637_v59 = vpop.f32.mrf.mxu0 }
 0x10f   : > { %v638_v60 = vadd.f32 %v1787_v56, %v637_v59  ;;  %v685_v61 = vmul.f32 0.01, %v643_v58  ;;  %vm677_vm1 = vcmp.ge.f32.partialorder %v643_v58, 0.0 }
 0x110   : > { %v1904_v62 = vpop.f32.mrf.mxu0 }
 0x111   : > { %v653_v63 = vadd.f32 %v1904_v62, %v1787_v56  ;;  %vm676_vm2 = vcmp.ge.f32.partialorder %v638_v60, 0.0  ;;  %v684_v0 = vmul.f32 0.01, %v638_v60  ;;  %v693_v9 = vsel %vm677_vm1, %v643_v58, %v685_v61 }
 0x112   : > { %v647_v2 = vpop.f32.mrf.mxu0 }
 0x113   : > { %v648_v3 = vadd.f32 %v1787_v56, %v647_v2  ;;  %v692_v5 = vsel %vm676_vm2, %v638_v60, %v684_v0  ;;  %v687_v7 = vmul.f32 0.01, %v653_v63  ;;  %vm679_vm3 = vcmp.ge.f32.partialorder %v653_v63, 0.0  ;;  %v1028_v2 = vld [vmem:[#allocation6] sm:$0xff] }
 0x114   : > { %v1907_v8 = vpop.f32.mrf.mxu0  ;;  %1919 = vmatprep.mubr.msk.f32.mxu1 %vm546_vm0, %v692_v5  ;;  %vm1037_vm2 = vcmask 130048  }
 0x115   : > { %vm678_vm4 = vcmp.ge.f32.partialorder %v648_v3, 0.0  ;;  %v686_v10 = vmul.f32 0.01, %v648_v3  ;;  %v663_v11 = vadd.f32 %v1907_v8, %v1787_v56  ;;  %1920 = vmatmul.mubr.msk.f32.vlgmr.msra.gmra.mxu1 %vm546_vm0, %v693_v9  ;;  %v695_v18 = vsel %vm679_vm3, %v653_v63, %v687_v7 }
 0x116   : > { %v657_v13 = vpop.f32.mrf.mxu0  ;;  %1952 = vmatpush3.msra.mxu1 %v1029_v31 }
 0x117   : > { %v658_v14 = vadd.f32 %v1787_v56, %v657_v13  ;;  %v694_v15 = vsel %vm678_vm4, %v648_v3, %v686_v10  ;;  %v689_v16 = vmul.f32 0.01, %v663_v11  ;;  %vm681_vm5 = vcmp.ge.f32.partialorder %v663_v11, 0.0  ;;  %1953 = vmatprep.subr.mxu1 %v1028_v2  ;;  %v1805_v3 = vld [vmem:[%s2603_s6] ss:$0 sm:$0xff] }
 0x118   : > { %v1910_v17 = vpop.f32.mrf.mxu0  ;;  %1922 = vmatprep.mubr.msk.f32.mxu1 %vm546_vm0, %v694_v15  ;;  %1954 = vmatpush3.msra.mxu1 %v1028_v2 }
 0x119   : > { %vm680_vm6 = vcmp.ge.f32.partialorder %v658_v14, 0.0  ;;  %v688_v19 = vmul.f32 0.01, %v658_v14  ;;  %v673_v20 = vadd.f32 %v1910_v17, %v1787_v56  ;;  %1923 = vmatmul.mubr.msk.f32.gmra.mxu1 %vm546_vm0, %v695_v18  ;;  %v697_v25 = vsel %vm681_vm5, %v663_v11, %v689_v16 }
 0x11a   : > { %v667_v21 = vpop.f32.mrf.mxu0 }
 0x11b   : > { %v668_v22 = vadd.f32 %v1787_v56, %v667_v21  ;;  %v696_v23 = vsel %vm680_vm6, %v658_v14, %v688_v19  ;;  %v691_v24 = vmul.f32 0.01, %v673_v20  ;;  %vm683_vm7 = vcmp.ge.f32.partialorder %v673_v20, 0.0 }
 0x11c   : > { %1925 = vmatprep.mubr.msk.f32.mxu1 %vm546_vm0, %v696_v23 }
 0x11d   : > { %vm682_vm8 = vcmp.ge.f32.partialorder %v668_v22, 0.0  ;;  %v690_v26 = vmul.f32 0.01, %v668_v22  ;;  %1926 = vmatmul.mubr.msk.f32.gmra.mxu1 %vm546_vm0, %v697_v25  ;;  %v699_v28 = vsel %vm683_vm7, %v673_v20, %v691_v24 }
 0x11f   : > { %v698_v27 = vsel %vm682_vm8, %v668_v22, %v690_v26 }
 0x120   : > { %1928 = vmatprep.mubr.msk.f32.mxu1 %vm546_vm0, %v698_v27 }
 0x121   : > { %1929 = vmatmul.mubr.msk.f32.gmra.mxu1 %vm546_vm0, %v699_v28 }
 0x1d5   : > { %v1921_v33 = vpop.f32.mrf.mxu1 }
 0x1d6   : > { %v807_v34 = vadd.f32 %v1921_v33, %v1796_v32 }
 0x1d7   : > { %v801_v35 = vpop.f32.mrf.mxu1 }
 0x1d8   : > { %v802_v36 = vadd.f32 %v1796_v32, %v801_v35  ;;  %v849_v37 = vmul.f32 0.01, %v807_v34  ;;  %vm841_vm9 = vcmp.ge.f32.partialorder %v807_v34, 0.0 }
 0x1d9   : > { %v1924_v38 = vpop.f32.mrf.mxu1 }
 0x1da   : > { %vm840_vm10 = vcmp.ge.f32.partialorder %v802_v36, 0.0  ;;  %v848_v39 = vmul.f32 0.01, %v802_v36  ;;  %v817_v40 = vadd.f32 %v1924_v38, %v1796_v32  ;;  %v857_v44 = vsel %vm841_vm9, %v807_v34, %v849_v37 }
 0x1db   : > { %v811_v41 = vpop.f32.mrf.mxu1 }
 0x1dc   : > { %v812_v42 = vadd.f32 %v1796_v32, %v811_v41  ;;  %v856_v43 = vsel %vm840_vm10, %v802_v36, %v848_v39  ;;  %v851_v45 = vmul.f32 0.01, %v817_v40  ;;  %vm843_vm11 = vcmp.ge.f32.partialorder %v817_v40, 0.0 }
 0x1dd   : > { %v1927_v46 = vpop.f32.mrf.mxu1  ;;  %1939 = vmatprep.mubr.msk.f32.mxu0 %vm546_vm0, %v856_v43  ;;  %v2197_v39 = vmov 0  }
 0x1de   : > { %vm842_vm12 = vcmp.ge.f32.partialorder %v812_v42, 0.0  ;;  %v850_v47 = vmul.f32 0.01, %v812_v42  ;;  %v827_v48 = vadd.f32 %v1927_v46, %v1796_v32  ;;  %1940 = vmatmul.mubr.msk.f32.vlgmr.msra.gmra.mxu0 %vm546_vm0, %v857_v44  ;;  %v859_v54 = vsel %vm843_vm11, %v817_v40, %v851_v45  ;;  %2048 = vset.pattern.permute.xlu0 %v2197_v39  ;;  %v1814_v40 = vld [vmem:[%s2605_s8] ss:$0 sm:$0xff] }
 0x1df   : > { %v821_v49 = vpop.f32.mrf.mxu1  ;;  %v1823_v46 = vld [vmem:[%s2606_s9] ss:$0 sm:$0xff] }
 0x1e0   : > { %v822_v50 = vadd.f32 %v1796_v32, %v821_v49  ;;  %v858_v51 = vsel %vm842_vm12, %v812_v42, %v850_v47  ;;  %v853_v52 = vmul.f32 0.01, %v827_v48  ;;  %vm845_vm13 = vcmp.ge.f32.partialorder %v827_v48, 0.0 }
 0x1e1   : > { %v1930_v53 = vpop.f32.mrf.mxu1  ;;  %1942 = vmatprep.mubr.msk.f32.mxu0 %vm546_vm0, %v858_v51 }
 0x1e2   : > { %vm844_vm14 = vcmp.ge.f32.partialorder %v822_v50, 0.0  ;;  %v852_v55 = vmul.f32 0.01, %v822_v50  ;;  %v837_v56 = vadd.f32 %v1930_v53, %v1796_v32  ;;  %1943 = vmatmul.mubr.msk.f32.gmra.mxu0 %vm546_vm0, %v859_v54  ;;  %v861_v61 = vsel %vm845_vm13, %v827_v48, %v853_v52 }
 0x1e3   : > { %v831_v57 = vpop.f32.mrf.mxu1 }
 0x1e4   : > { %v832_v58 = vadd.f32 %v1796_v32, %v831_v57  ;;  %v860_v59 = vsel %vm844_vm14, %v822_v50, %v852_v55  ;;  %v855_v60 = vmul.f32 0.01, %v837_v56  ;;  %vm847_vm15 = vcmp.ge.f32.partialorder %v837_v56, 0.0 }
 0x1e5   : > { %1945 = vmatprep.mubr.msk.f32.mxu0 %vm546_vm0, %v860_v59 }
 0x1e6   : > { %vm846_vm1 = vcmp.ge.f32.partialorder %v832_v58, 0.0  ;;  %v854_v62 = vmul.f32 0.01, %v832_v58  ;;  %1946 = vmatmul.mubr.msk.f32.gmra.mxu0 %vm546_vm0, %v861_v61  ;;  %v863_v0 = vsel %vm847_vm15, %v837_v56, %v855_v60 }
 0x1e8   : > { %v862_v63 = vsel %vm846_vm1, %v832_v58, %v854_v62 }
 0x1e9   : > { %1948 = vmatprep.mubr.msk.f32.mxu0 %vm546_vm0, %v862_v63 }
 0x1ea   : > { %1949 = vmatmul.mubr.msk.f32.gmra.mxu0 %vm546_vm0, %v863_v0 }
 0x29e   : > { %v1941_v5 = vpop.f32.mrf.mxu0 }
 0x29f   : > { %v971_v7 = vadd.f32 %v1941_v5, %v1805_v3 }
 0x2a0   : > { %v965_v8 = vpop.f32.mrf.mxu0 }
 0x2a1   : > { %v966_v9 = vadd.f32 %v1805_v3, %v965_v8  ;;  %v1013_v10 = vmul.f32 0.01, %v971_v7  ;;  %vm1005_vm3 = vcmp.ge.f32.partialorder %v971_v7, 0.0 }
 0x2a2   : > { %v1944_v11 = vpop.f32.mrf.mxu0 }
 0x2a3   : > { %vm1004_vm4 = vcmp.ge.f32.partialorder %v966_v9, 0.0  ;;  %v1012_v13 = vmul.f32 0.01, %v966_v9  ;;  %v981_v14 = vadd.f32 %v1944_v11, %v1805_v3  ;;  %v1021_v18 = vsel %vm1005_vm3, %v971_v7, %v1013_v10 }
 0x2a4   : > { %v975_v15 = vpop.f32.mrf.mxu0 }
 0x2a5   : > { %v976_v16 = vadd.f32 %v1805_v3, %v975_v15  ;;  %v1020_v17 = vsel %vm1004_vm4, %v966_v9, %v1012_v13  ;;  %v1015_v19 = vmul.f32 0.01, %v981_v14  ;;  %vm1007_vm0 = vcmp.ge.f32.partialorder %v981_v14, 0.0 }
 0x2a6   : > { %v1947_v20 = vpop.f32.mrf.mxu0  ;;  %1955 = vmatprep.mubr.msk.f32.mxu1 %vm1037_vm2, %v1020_v17  ;;  %vm1301_vm4 = vcmask 1041409  }
 0x2a7   : > { %vm1006_vm5 = vcmp.ge.f32.partialorder %v976_v16, 0.0  ;;  %v1014_v21 = vmul.f32 0.01, %v976_v16  ;;  %v991_v22 = vadd.f32 %v1947_v20, %v1805_v3  ;;  %1956 = vmatmul.mubr.msk.f32.vlgmr.msra.gmra.mxu1 %vm1037_vm2, %v1021_v18  ;;  %v1023_v28 = vsel %vm1007_vm0, %v981_v14, %v1015_v19 }
 0x2a8   : > { %v985_v23 = vpop.f32.mrf.mxu0  ;;  %vm1305_vm0 = vcmask 1043459  }
 0x2a9   : > { %v986_v24 = vadd.f32 %v1805_v3, %v985_v23  ;;  %v1022_v25 = vsel %vm1006_vm5, %v976_v16, %v1014_v21  ;;  %v1017_v26 = vmul.f32 0.01, %v991_v22  ;;  %vm1009_vm6 = vcmp.ge.f32.partialorder %v991_v22, 0.0 }
 0x2aa   : > { %v1950_v27 = vpop.f32.mrf.mxu0  ;;  %1958 = vmatprep.mubr.msk.f32.mxu1 %vm1037_vm2, %v1022_v25  ;;  %vm1307_vm5 = vcmask 1044484  }
 0x2ab   : > { %vm1008_vm7 = vcmp.ge.f32.partialorder %v986_v24, 0.0  ;;  %v1016_v29 = vmul.f32 0.01, %v986_v24  ;;  %v1001_v30 = vadd.f32 %v1950_v27, %v1805_v3  ;;  %1959 = vmatmul.mubr.msk.f32.gmra.mxu1 %vm1037_vm2, %v1023_v28  ;;  %v1025_v35 = vsel %vm1009_vm6, %v991_v22, %v1017_v26 }
 0x2ac   : > { %v995_v31 = vpop.f32.mrf.mxu0  ;;  %vm1309_vm6 = vcmask 1045509  }
 0x2ad   : > { %v996_v32 = vadd.f32 %v1805_v3, %v995_v31  ;;  %v1024_v33 = vsel %vm1008_vm7, %v986_v24, %v1016_v29  ;;  %v1019_v34 = vmul.f32 0.01, %v1001_v30  ;;  %vm1011_vm8 = vcmp.ge.f32.partialorder %v1001_v30, 0.0 }
 0x2ae   : > { %1961 = vmatprep.mubr.msk.f32.mxu1 %vm1037_vm2, %v1024_v33  ;;  %vm1311_vm7 = vcmask 1046534  }
 0x2af   : > { %vm1010_vm9 = vcmp.ge.f32.partialorder %v996_v32, 0.0  ;;  %v1018_v36 = vmul.f32 0.01, %v996_v32  ;;  %1962 = vmatmul.mubr.msk.f32.gmra.mxu1 %vm1037_vm2, %v1025_v35  ;;  %v1027_v38 = vsel %vm1011_vm8, %v1001_v30, %v1019_v34  ;;  %v1824_v30 = vld [vmem:[#allocation2] ss:$0 sm:$0xff]  ;;  %vm1313_vm8 = vcmask 1047559  }
 0x2b1   : > { %v1026_v37 = vsel %vm1010_vm9, %v996_v32, %v1018_v36 }
 0x2b2   : > { %1964 = vmatprep.mubr.msk.f32.mxu1 %vm1037_vm2, %v1026_v37 }
 0x2b3   : > { %1965 = vmatmul.mubr.msk.f32.gmra.mxu1 %vm1037_vm2, %v1027_v38  ;;  %v1251_v38 = vand.u32 127, %v434_v1 }
 0x2b5   : > { %v1271_v39 = vsub.s32 %v1251_v38, %v2365_v4  ;;  %vm1252_vm9 = vcmp.eq.s32.totalorder %v2365_v4, %v1251_v38 }
 0x367   : > { %v1957_v41 = vpop.f32.mrf.mxu1 }
 0x368   : > { %v1134_v42 = vadd.f32 %v1957_v41, %v1814_v40 }
 0x369   : > { %v1128_v43 = vpop.f32.mrf.mxu1 }
 0x36a   : > { %v1176_v44 = vmul.f32 0.01, %v1134_v42  ;;  %v1129_v45 = vadd.f32 %v1814_v40, %v1128_v43  ;;  %vm1168_vm10 = vcmp.ge.f32.partialorder %v1134_v42, 0.0 }
 0x36b   : > { %v1960_v47 = vpop.f32.mrf.mxu1 }
 0x36c   : > { %vm1167_vm11 = vcmp.ge.f32.partialorder %v1129_v45, 0.0  ;;  %v1175_v48 = vmul.f32 0.01, %v1129_v45  ;;  %v1144_v49 = vadd.f32 %v1960_v47, %v1814_v40  ;;  %v1184_v50 = vsel %vm1168_vm10, %v1134_v42, %v1176_v44 }
 0x36d   : > { %v1138_v51 = vpop.f32.mrf.mxu1  ;;  %v1199_v52 = vmul.f32 %v1823_v46, %v1184_v50  ;;  %vm1535_vm10 = vcmask 64512  }
 0x36e   : > { %v1178_v53 = vmul.f32 0.01, %v1144_v49  ;;  %v1139_v54 = vadd.f32 %v1814_v40, %v1138_v51  ;;  %vm1170_vm12 = vcmp.ge.f32.partialorder %v1144_v49, 0.0  ;;  %v1183_v55 = vsel %vm1167_vm11, %v1129_v45, %v1175_v48 }
 0x36f   : > { %v1963_v56 = vpop.f32.mrf.mxu1  ;;  %v1209_v57 = vsel %vm1037_vm2, %v1199_v52, 0.0  ;;  %v1198_v58 = vmul.f32 %v1823_v46, %v1183_v55 }
 0x370   : > { %vm1169_vm13 = vcmp.ge.f32.partialorder %v1139_v54, 0.0  ;;  %v1177_v59 = vmul.f32 0.01, %v1139_v54  ;;  %v1154_v60 = vadd.f32 %v1963_v56, %v1814_v40  ;;  %1210 = vadd.xlane.f32.xlu0 %v1209_v57  ;;  %v1186_v61 = vsel %vm1170_vm12, %v1144_v49, %v1178_v53 }
 0x371   : > { %v1148_v62 = vpop.f32.mrf.mxu1  ;;  %v1201_v63 = vmul.f32 %v1823_v46, %v1186_v61  ;;  %v1206_v8 = vsel %vm1037_vm2, %v1198_v58, 0.0 }
 0x372   : > { %vm1172_vm14 = vcmp.ge.f32.partialorder %v1154_v60, 0.0  ;;  %v1180_v0 = vmul.f32 0.01, %v1154_v60  ;;  %v1149_v2 = vadd.f32 %v1814_v40, %v1148_v62  ;;  %v1185_v3 = vsel %vm1169_vm13, %v1139_v54, %v1177_v59 }
 0x373   : > { %v1966_v5 = vpop.f32.mrf.mxu1  ;;  %v1215_v7 = vsel %vm1037_vm2, %v1201_v63, 0.0  ;;  %v1200_v9 = vmul.f32 %v1823_v46, %v1185_v3 }
 0x374   : > { %vm1171_vm15 = vcmp.ge.f32.partialorder %v1149_v2, 0.0  ;;  %v1179_v10 = vmul.f32 0.01, %v1149_v2  ;;  %v1164_v11 = vadd.f32 %v1966_v5, %v1814_v40  ;;  %1216 = vadd.xlane.f32.xlu1 %v1215_v7  ;;  %1207 = vadd.xlane.f32.xlu0 %v1206_v8  ;;  %v1188_v13 = vsel %vm1172_vm14, %v1154_v60, %v1180_v0 }
 0x375   : > { %v1158_v14 = vpop.f32.mrf.mxu1  ;;  %v1212_v18 = vsel %vm1037_vm2, %v1200_v9, 0.0  ;;  %v1203_v20 = vmul.f32 %v1823_v46, %v1188_v13 }
 0x376   : > { %vm1174_vm1 = vcmp.ge.f32.partialorder %v1164_v11, 0.0  ;;  %v1182_v15 = vmul.f32 0.01, %v1164_v11  ;;  %v1159_v16 = vadd.f32 %v1814_v40, %v1158_v14  ;;  %v1187_v17 = vsel %vm1171_vm15, %v1149_v2, %v1179_v10 }
 0x377   : > { %v1202_v19 = vmul.f32 %v1823_v46, %v1187_v17  ;;  %v1221_v25 = vsel %vm1037_vm2, %v1203_v20, 0.0 }
 0x378   : > { %vm1173_vm3 = vcmp.ge.f32.partialorder %v1159_v16, 0.0  ;;  %v1181_v21 = vmul.f32 0.01, %v1159_v16  ;;  %1213 = vadd.xlane.f32.xlu1 %v1212_v18  ;;  %v1190_v22 = vsel %vm1174_vm1, %v1164_v11, %v1182_v15 }
 0x379   : > { %v1218_v23 = vsel %vm1037_vm2, %v1202_v19, 0.0  ;;  %v1205_v27 = vmul.f32 %v1823_v46, %v1190_v22 }
 0x37a   : > { %1219 = vadd.xlane.f32.xlu0 %v1218_v23  ;;  %v1189_v24 = vsel %vm1173_vm3, %v1159_v16, %v1181_v21 }
 0x37b   : > { %v1204_v26 = vmul.f32 %v1823_v46, %v1189_v24  ;;  %v1227_v29 = vsel %vm1037_vm2, %v1205_v27, 0.0 }
 0x37c   : > { %1222 = vadd.xlane.f32.xlu1 %v1221_v25  ;;  %v1374_v25 = vsub.s32 1, %v2365_v4 }
 0x37d   : > { %v1224_v28 = vsel %vm1037_vm2, %v1204_v26, 0.0  ;;  %vm1303_vm2 = vcmask 1042434  }
 0x37e   : > { %1225 = vadd.xlane.f32.xlu0 %v1224_v28 }
 0x380   : > { %1228 = vadd.xlane.f32.xlu1 %v1227_v29 }
 0x394   : > { %1237 = vperm.xlu0 %2048, %v1824_v30   ;;  %v1381_v30 = vsub.s32 2, %v2365_v4 }
 0x3f9   : > { %v1211_v31 = vpop.xlane.xlu0 %1210 }
 0x3fd   : > { %v1217_v32 = vpop.xlane.xlu1 %1216  ;;  %v1208_v33 = vpop.xlane.xlu0 %1207 }
 0x401   : > { %v1214_v34 = vpop.xlane.xlu1 %1213 }
 0x403   : > { %v1220_v35 = vpop.xlane.xlu0 %1219 }
 0x405   : > { %v1223_v36 = vpop.xlane.xlu1 %1222 }
 0x407   : > { %v1226_v37 = vpop.xlane.xlu0 %1225 }
 0x409   : > { %v1229_v45 = vpop.xlane.xlu1 %1228 }
 0x40f   : > { %v1238_v40 = vpop.permute.xlu0 %1237 }
 0x410   : > { %v1240_v41 = vadd.f32 %v1238_v40, %v1208_v33  ;;  %v1241_v42 = vadd.f32 %v1238_v40, %v1211_v31  ;;  %v1242_v43 = vadd.f32 %v1238_v40, %v1214_v34  ;;  %v1243_v44 = vadd.f32 %v1238_v40, %v1217_v32 }
 0x411   : > { %v1244_v46 = vadd.f32 %v1238_v40, %v1220_v35  ;;  %v1245_v47 = vadd.f32 %v1238_v40, %v1223_v36  ;;  %v1246_v48 = vadd.f32 %v1238_v40, %v1226_v37  ;;  %v1247_v49 = vadd.f32 %v1238_v40, %v1229_v45 }
 0x412   : > { %v1825_v50 = vadd.f32 -1e+08, %v1240_v41  ;;  %v1826_v51 = vadd.f32 -1e+08, %v1241_v42  ;;  %v1827_v52 = vadd.f32 -1e+08, %v1242_v43  ;;  %v1327_v54 = vrot.slane %v1240_v41, %v1271_v39 }
 0x413   : > { %v1828_v53 = vadd.f32 -1e+08, %v1243_v44  ;;  %v1829_v1 = vadd.f32 -1e+08, %v1244_v46  ;;  %v1830_v55 = vadd.f32 -1e+08, %v1245_v47  ;;  %v1331_v58 = vrot.slane %v1241_v42, %v1271_v39 }
 0x414   : > { %v1272_v56 = vrot.slane %v1825_v50, %v1271_v39  ;;  %v1276_v57 = vrot.slane %v1826_v51, %v1271_v39  ;;  %v1831_v59 = vadd.f32 -1e+08, %v1246_v48  ;;  %v1280_v60 = vrot.slane %v1827_v52, %v1271_v39 }
 0x415   : > { %v1832_v61 = vadd.f32 -1e+08, %v1247_v49  ;;  %v1284_v62 = vrot.slane %v1828_v53, %v1271_v39  ;;  %v1335_v0 = vrot.slane %v1242_v43, %v1271_v39  ;;  %v1288_v2 = vrot.slane %v1829_v1, %v1271_v39 }
 0x416   : > { %v1302_v63 = vsel %vm1301_vm4, %v1276_v57, %v1272_v56  ;;  %v1292_v5 = vrot.slane %v1830_v55, %v1271_v39  ;;  %v1339_v8 = vrot.slane %v1243_v44, %v1271_v39  ;;  %v1356_v9 = vsel %vm1301_vm4, %v1331_v58, %v1327_v54 }
 0x417   : > { %v1304_v3 = vsel %vm1303_vm2, %v1280_v60, %v1302_v63  ;;  %v1296_v10 = vrot.slane %v1831_v59, %v1271_v39  ;;  %v1343_v13 = vrot.slane %v1244_v46, %v1271_v39  ;;  %v1357_v14 = vsel %vm1303_vm2, %v1335_v0, %v1356_v9 }
 0x418   : > { %v1306_v7 = vsel %vm1305_vm0, %v1284_v62, %v1304_v3  ;;  %v1300_v15 = vrot.slane %v1832_v61, %v1271_v39  ;;  %v1347_v17 = vrot.slane %v1245_v47, %v1271_v39  ;;  %v1358_v18 = vsel %vm1305_vm0, %v1339_v8, %v1357_v14 }
 0x419   : > { %v1308_v11 = vsel %vm1307_vm5, %v1288_v2, %v1306_v7  ;;  %v1351_v20 = vrot.slane %v1246_v48, %v1271_v39  ;;  %v1359_v21 = vsel %vm1307_vm5, %v1343_v13, %v1358_v18  ;;  %v1355_v23 = vrot.slane %v1247_v49, %v1271_v39 }
 0x41a   : > { %v1310_v16 = vsel %vm1309_vm6, %v1292_v5, %v1308_v11  ;;  %v1360_v24 = vsel %vm1309_vm6, %v1347_v17, %v1359_v21  ;;  %v1388_v33 = vsub.s32 3, %v2365_v4  ;;  %v1395_v35 = vsub.s32 4, %v2365_v4 }
 0x41b   : > { %v1312_v19 = vsel %vm1311_vm7, %v1296_v10, %v1310_v16  ;;  %v1361_v26 = vsel %vm1311_vm7, %v1351_v20, %v1360_v24  ;;  %v1402_v37 = vsub.s32 5, %v2365_v4  ;;  %v1409_v39 = vsub.s32 6, %v2365_v4 }
 0x41c   : > { %v1314_v22 = vsel %vm1313_vm8, %v1300_v15, %v1312_v19  ;;  %v1362_v27 = vsel %vm1313_vm8, %v1355_v23, %v1361_v26  ;;  %v1416_v41 = vsub.s32 7, %v2365_v4  ;;  %v2198_v50 = vmov 0.0  }
 0x41d   : > { %v2487_v28 = vsel %vm1252_vm9, %v1314_v22, %v1362_v27 }
 0x41e   : > { %v1375_v29 = vrot.slane %v2487_v28, %v1374_v25  ;;  %v1382_v31 = vrot.slane %v2487_v28, %v1381_v30  ;;  %v1368_v32 = vrot.slane %v2487_v28, %v2384_v12  ;;  %v1389_v34 = vrot.slane %v2487_v28, %v1388_v33 }
 0x41f   : > { %v1396_v36 = vrot.slane %v2487_v28, %v1395_v35  ;;  %v1403_v38 = vrot.slane %v2487_v28, %v1402_v37  ;;  %v1410_v40 = vrot.slane %v2487_v28, %v1409_v39  ;;  %v1417_v42 = vrot.slane %v2487_v28, %v1416_v41 }
 0x420   : > { %1377 = vbcast.lane.b32.xlu1 %v1375_v29, 256  ;;  %v1429_v43 = vrot.slane %v2487_v28, %v2371_v6  ;;  %v1422_v51 = vcombine.high %v2487_v28, %v2487_v28 }
 0x422   : > { %v1437_v44 = vcombine.high %v1429_v43, %v1429_v43  ;;  %v1445_v46 = vrot.slane %v1429_v43, %v2371_v6  ;;  %v1436_v56 = vrot.slane %v1422_v51, %v2371_v6 }
 0x424   : > { %1384 = vbcast.lane.b32.xlu1 %v1382_v31, 256  ;;  %v1459_v45 = vrot.slane %v1437_v44, %v2371_v6  ;;  %v1467_v48 = vcombine.high %v1445_v46, %v1445_v46  ;;  %v1474_v57 = vrot.slane %v1445_v46, %v2384_v12  ;;  %v1452_v63 = vrot.slane %v1436_v56, %v2371_v6 }
 0x425   : > { %v1438_v5 = vcombine.high %v1436_v56, %v1436_v56 }
 0x426   : > { %v1478_v47 = vrot.slane %v1459_v45, %v2384_v12  ;;  %v1482_v53 = vrot.slane %v1467_v48, %v2384_v12  ;;  %v1469_v58 = vcombine.high %v1459_v45, %v1459_v45  ;;  %v1490_v15 = vrot.slane %v1452_v63, %v2384_v12 }
 0x427   : > { %v1466_v16 = vrot.slane %v1438_v5, %v2371_v6  ;;  %v1468_v22 = vcombine.high %v1452_v63, %v1452_v63 }
 0x428   : > { %1370 = vbcast.lane.b32.xlu1 %v1368_v32, 256  ;;  %v1486_v3 = vrot.slane %v1469_v58, %v2384_v12 }
 0x429   : > { %v1494_v25 = vrot.slane %v1466_v16, %v2384_v12 }
 0x42c   : > { %1391 = vbcast.lane.b32.xlu1 %v1389_v34, 256  ;;  %v1498_v34 = vrot.slane %v1468_v22, %v2384_v12  ;;  %v1613_v22 = vrot.slane %v2487_v28, 6 }
 0x430   : > { %1398 = vbcast.lane.b32.xlu1 %v1396_v36, 256 }
 0x434   : > { %1405 = vbcast.lane.b32.xlu1 %v1403_v38, 256  ;;  %v1470_v38 = vcombine.high %v1466_v16, %v1466_v16  ;;  %v1612_v16 = vrot.slane %v2487_v28, 5 }
 0x438   : > { %1412 = vbcast.lane.b32.xlu1 %v1410_v40, 256 }
 0x43c   : > { %1419 = vbcast.lane.b32.xlu1 %v1417_v42, 256 }
 0x492   : > { %v1378_v49 = vpop.permute.xlu1 %1377 }
 0x493   : > { %vm1512_vm11 = vcmp.le.f32.partialorder %v1378_v49, %v1478_v47 }
 0x494   : > { %v1834_v4 = vsel %vm1512_vm11, 1.0, %v2198_v50 }
 0x495   : > { %v1543_v52 = vsel %vm1535_vm10, %v1834_v4, 0.0  ;;  %v1502_v4 = vrot.slane %v1470_v38, %v2384_v12 }
 0x496   : > { %v1385_v1 = vpop.permute.xlu1 %1384  ;;  %v1544_v54 = vrot.slane %v1543_v52, 4 }
 0x497   : > { %vm1513_vm12 = vcmp.le.f32.partialorder %v1385_v1, %v1482_v53 }
 0x498   : > { %v1835_v55 = vsel %vm1513_vm12, 1.0, %v2198_v50  ;;  %v1545_v61 = vadd.f32 %v1544_v54, %v1543_v52 }
 0x499   : > { %v1550_v59 = vsel %vm1535_vm10, %v1835_v55, 0.0 }
 0x49a   : > { %v1371_v60 = vpop.permute.xlu1 %1370  ;;  %v1551_v0 = vrot.slane %v1550_v59, 4  ;;  %v1546_v9 = vrot.slane %v1545_v61, 2 }
 0x49b   : > { %vm1511_vm13 = vcmp.le.f32.partialorder %v1371_v60, %v1474_v57 }
 0x49c   : > { %v1833_v62 = vsel %vm1511_vm13, 1.0, %v2198_v50  ;;  %v1552_v13 = vadd.f32 %v1551_v0, %v1550_v59  ;;  %v1547_v19 = vadd.f32 %v1546_v9, %v1545_v61  ;;  %v1608_v59 = vrot.slane %v2487_v28, 1 }
 0x49d   : > { %v1536_v2 = vsel %vm1535_vm10, %v1833_v62, 0.0  ;;  %v1611_v9 = vrot.slane %v2487_v28, 4 }
 0x49e   : > { %v1537_v7 = vrot.slane %v1536_v2, 4  ;;  %v1392_v8 = vpop.permute.xlu1 %1391  ;;  %v1553_v23 = vrot.slane %v1552_v13, 2  ;;  %v1548_v30 = vrot.slane %v1547_v19, 1 }
 0x49f   : > { %vm1514_vm14 = vcmp.le.f32.partialorder %v1392_v8, %v1486_v3  ;;  %v1609_v8 = vrot.slane %v2487_v28, 2 }
 0x4a0   : > { %v1538_v10 = vadd.f32 %v1537_v7, %v1536_v2  ;;  %v1836_v11 = vsel %vm1514_vm14, 1.0, %v2198_v50  ;;  %v1554_v35 = vadd.f32 %v1553_v23, %v1552_v13  ;;  %v1549_v41 = vadd.f32 %v1548_v30, %v1547_v19 }
 0x4a1   : > { %v1557_v14 = vsel %vm1535_vm10, %v1836_v11, 0.0 }
 0x4a2   : > { %v1558_v17 = vrot.slane %v1557_v14, 4  ;;  %v1399_v18 = vpop.permute.xlu1 %1398  ;;  %v1539_v20 = vrot.slane %v1538_v10, 2  ;;  %v1555_v47 = vrot.slane %v1554_v35, 1  ;;  %vm1601_vm9 = vcmp.ge.f32.partialorder %v1549_v41, 4.0 }
 0x4a3   : > { %vm1515_vm15 = vcmp.le.f32.partialorder %v1399_v18, %v1490_v15  ;;  %v1624_v2 = vsel %vm1601_vm9, %v1608_v59, inf }
 0x4a4   : > { %v1559_v21 = vadd.f32 %v1558_v17, %v1557_v14  ;;  %v1837_v24 = vsel %vm1515_vm15, 1.0, %v2198_v50  ;;  %v1540_v31 = vadd.f32 %v1539_v20, %v1538_v10  ;;  %v1556_v60 = vadd.f32 %v1555_v47, %v1554_v35 }
 0x4a5   : > { %v1564_v27 = vsel %vm1535_vm10, %v1837_v24, 0.0  ;;  %v1639_v13 = vrot.slane %v1624_v2, 7 }
 0x4a6   : > { %v1560_v26 = vrot.slane %v1559_v21, 2  ;;  %v1406_v29 = vpop.permute.xlu1 %1405  ;;  %v1565_v32 = vrot.slane %v1564_v27, 4  ;;  %v1541_v42 = vrot.slane %v1540_v31, 1  ;;  %vm1602_vm14 = vcmp.ge.f32.partialorder %v1556_v60, 4.0 }
 0x4a7   : > { %vm1516_vm1 = vcmp.le.f32.partialorder %v1406_v29, %v1494_v25  ;;  %v1625_v17 = vsel %vm1602_vm14, %v1609_v8, inf }
 0x4a8   : > { %v1561_v6 = vadd.f32 %v1560_v26, %v1559_v21  ;;  %v1838_v33 = vsel %vm1516_vm1, 1.0, %v2198_v50  ;;  %v1566_v36 = vadd.f32 %v1565_v32, %v1564_v27  ;;  %v1542_v1 = vadd.f32 %v1541_v42, %v1540_v31 }
 0x4a9   : > { %v1571_v37 = vsel %vm1535_vm10, %v1838_v33, 0.0  ;;  %v1641_v26 = vrot.slane %v1625_v17, 6  ;;  %v1614_v32 = vrot.slane %v2487_v28, 7 }
 0x4aa   : > { %v1572_v39 = vrot.slane %v1571_v37, 4  ;;  %v1413_v40 = vpop.permute.xlu1 %1412  ;;  %v1567_v43 = vrot.slane %v1566_v36, 2  ;;  %v1562_v44 = vrot.slane %v1561_v6, 1  ;;  %vm1600_vm12 = vcmp.ge.f32.partialorder %v1542_v1, 4.0 }
 0x4ab   : > { %vm1517_vm3 = vcmp.le.f32.partialorder %v1413_v40, %v1498_v34  ;;  %v1623_v14 = vsel %vm1600_vm12, %v2487_v28, inf }
 0x4ac   : > { %v1573_v45 = vadd.f32 %v1572_v39, %v1571_v37  ;;  %v1839_v46 = vsel %vm1517_vm3, 1.0, %v2198_v50  ;;  %v1568_v48 = vadd.f32 %v1567_v43, %v1566_v36  ;;  %v1563_v55 = vadd.f32 %v1562_v44, %v1561_v6 }
 0x4ad   : > { %v1578_v49 = vsel %vm1535_vm10, %v1839_v46, 0.0  ;;  %v1640_v23 = vsel %vm1301_vm4, %v1639_v13, %v1623_v14 }
 0x4ae   : > { %v1574_v51 = vrot.slane %v1573_v45, 2  ;;  %v1579_v52 = vrot.slane %v1578_v49, 4  ;;  %v1420_v53 = vpop.permute.xlu1 %1419  ;;  %v1569_v54 = vrot.slane %v1568_v48, 1  ;;  %vm1603_vm13 = vcmp.ge.f32.partialorder %v1563_v55, 4.0 }
 0x4af   : > { %vm1518_vm11 = vcmp.le.f32.partialorder %v1420_v53, %v1502_v4  ;;  %v1642_v6 = vsel %vm1303_vm2, %v1641_v26, %v1640_v23 }
 0x4b0   : > { %v1575_v56 = vadd.f32 %v1574_v51, %v1573_v45  ;;  %v1580_v57 = vadd.f32 %v1579_v52, %v1578_v49  ;;  %v1840_v58 = vsel %vm1518_vm11, 1.0, %v2198_v50  ;;  %v1570_v61 = vadd.f32 %v1569_v54, %v1568_v48 }
 0x4b1   : > { %v1585_v62 = vsel %vm1535_vm10, %v1840_v58, 0.0  ;;  %v1610_v50 = vrot.slane %v2487_v28, 3 }
 0x4b2   : > { %v1576_v63 = vrot.slane %v1575_v56, 1  ;;  %v1581_v12 = vrot.slane %v1580_v57, 2  ;;  %v1586_v0 = vrot.slane %v1585_v62, 4  ;;  %vm1604_vm15 = vcmp.ge.f32.partialorder %v1570_v61, 4.0 }
 0x4b3   : > { %v1626_v15 = vsel %vm1603_vm13, %v1610_v50, inf  ;;  %v1627_v18 = vsel %vm1604_vm15, %v1611_v9, inf }
 0x4b4   : > { %v1577_v3 = vadd.f32 %v1576_v63, %v1575_v56  ;;  %v1582_v5 = vadd.f32 %v1581_v12, %v1580_v57  ;;  %v1587_v7 = vadd.f32 %v1586_v0, %v1585_v62  ;;  %v1643_v24 = vrot.slane %v1626_v15, 5 }
 0x4b5   : > { %v1645_v27 = vrot.slane %v1627_v18, 4 }
 0x4b6   : > { %vm1605_vm1 = vcmp.ge.f32.partialorder %v1577_v3, 4.0  ;;  %v1583_v10 = vrot.slane %v1582_v5, 1  ;;  %v1588_v11 = vrot.slane %v1587_v7, 2  ;;  %v1644_v34 = vsel %vm1305_vm0, %v1643_v24, %v1642_v6 }
 0x4b7   : > { %v1628_v21 = vsel %vm1605_vm1, %v1612_v16, inf  ;;  %v1646_v36 = vsel %vm1307_vm5, %v1645_v27, %v1644_v34 }
 0x4b8   : > { %v1584_v19 = vadd.f32 %v1583_v10, %v1582_v5  ;;  %v1589_v20 = vadd.f32 %v1588_v11, %v1587_v7  ;;  %v1647_v30 = vrot.slane %v1628_v21, 3 }
 0x4ba   : > { %vm1606_vm3 = vcmp.ge.f32.partialorder %v1584_v19, 4.0  ;;  %v1590_v25 = vrot.slane %v1589_v20, 1  ;;  %v1648_v37 = vsel %vm1309_vm6, %v1647_v30, %v1646_v36 }
 0x4bb   : > { %v1629_v29 = vsel %vm1606_vm3, %v1613_v22, inf }
 0x4bc   : > { %v1591_v31 = vadd.f32 %v1590_v25, %v1589_v20  ;;  %v1649_v33 = vrot.slane %v1629_v29, 2 }
 0x4be   : > { %vm1607_vm9 = vcmp.ge.f32.partialorder %v1591_v31, 4.0  ;;  %v1650_v39 = vsel %vm1311_vm7, %v1649_v33, %v1648_v37 }
 0x4bf   : > { %v1630_v35 = vsel %vm1607_vm9, %v1614_v32, inf }
 0x4c0   : > { %v1651_v38 = vrot.slane %v1630_v35, 1 }
 0x4c2   : > { %v1652_v40 = vsel %vm1313_vm8, %v1651_v38, %v1650_v39 }
 0x4c3   : > { %v1654_v41 = vsel %vm1535_vm10, %v1652_v40, inf }
 0x4c4   : > { %1655 = vmin.xlane.f32.xlu0 %v1654_v41 }
 0x54d   : > { %v1656_v42 = vpop.xlane.xlu0 %1655 }
 0x54e   : > { %vm1657_vm4 = vcmp.ge.f32.partialorder %v2487_v28, %v1656_v42 }
 0x54f   : > { %v1658_v43 = vsel %vm1657_vm4, %v2487_v28, -1000.0 }
 0x550   : > { %v1659_v44 = vsel %vm1535_vm10, %v1658_v43, -inf }
 0x551   : > { %1660 = vmax.xlane.f32.xlu1 %v1659_v44 }
 0x5da   : > { %v1661_v45 = vpop.xlane.xlu1 %1660 }
 0x5db   : > { %v1662_v46 = vsub.f32 %v1658_v43, %v1661_v45 }
 0x5dd   : > { %v1663_v47 = vmul.f32 1.442695, %v1662_v46 }
 0x5df   : > { %2050 = vpow2.f32 %v1663_v47 }
 0x5ec   : > { %v2051_v48 = vpop.eup %2050 }
 0x5ed   : > { %v1665_v49 = vsel %vm1535_vm10, %v2051_v48, 0.0 }
 0x5ee   : > { %1666 = vadd.xlane.f32.xlu0 %v1665_v49 }
 0x677   : > { %v1667_v4 = vpop.xlane.xlu0 %1666 }
 0x678   : > { %2052 = vrcp.f32 %v1667_v4 }
 0x685   : > { %v2053_v28 = vpop.eup %2052 }
 0x686   : > { %v1669_v51 = vmul.f32 %v2053_v28, %v2051_v48 }
 0x688   : > { %1670 = vst.msk [vmem:[%s423_s18] sm:$0xff] %vm1535_vm10, %v1669_v51 }
 0x689   : > { %2119 = shalt.err (!%p2116_p9)
}
 0x68a   : > { %s2120_s29 = scalar_lea.hbm %s1684_s13, 128  ;;  %s2124_s18 = scalar_lea.hbm %s2608_s11, 256 }
 0x68b   : > { %p2121_p12 = scmp.ne.s32.totalorder %s1684_s13, %s2120_s29  ;;  %p2125_p5 = scmp.lt.s32.totalorder %s1684_s13, %s2608_s11 }
 0x68c   : > { %p2126_p3 = scmp.lt.s32.totalorder %s2124_s18, %s2120_s29 }
 0x68d   : > { %p2122_p1 = pnand %p2121_p12, %p2619_p10 }
 0x68e   : > { %p2127_p4 = por %p2126_p3, %p2125_p5 }
 0x68f   : > { %p2123_p2 = pneg %p2122_p1 }
 0x691   : > { %p2128_p8 = pnand %p2127_p4, %p2123_p2 }
 0x693   : > { %2131 = shalt.err (!%p2128_p8)
}
 0x694   : > { %1975 = dma.vmem_to_hbm [thread:$0]  (%p2619_p10), %s1687_s10, 128, %s1684_s13, %s1672_s16  }
 0x695 PF: > { %p1992_p11 = scmp.ge.s32.totalorder %s2190_s24, 2  ;;  %s1698_s17 = sand.u32 1, %s2170_s19  }
 0x696   : > { %p2620_p13 = scmp.ne.s32.totalorder %s2615_s30, 0  ;;  %s1699_s14 = scalar_lea.sflag [#allocation5], %s1698_s17 }
 0x698   : > { %p1985_p0 = pnand %p1992_p11, %p2620_p13 }
 0x69a   : > { %p1986_p6 = pneg %p1985_p0 }
 0x69c   : > { %2165 = dma.done.wait (%p1986_p6), %s1699_s14, 128  }
 0x69d   : > { %2167 = vsyncadd (%p1986_p6), %s1699_s14, 4294967168  ;;  %s28_s24 = sadd.s32 1, %s2190_s24   ;;  %s2621_s22 = sld [smem:[#allocation12_spill]] }
 0x69e   : > { %p25_p7 = scmp.ge.s32.totalorder %s28_s24, 4   ;;  %s2622_s23 = sld [smem:[#allocation13_spill]] }
 0x69f   : > { %s2623_s19 = smov %s2174_s20  ;;  %s2624_s20 = smov %s2178_s21 }
 0x6a0   : > { %s2625_s21 = smov %s2316_s12  ;;  %27 = sbr.rel (!%p25_p7) target bundleno = 9 (0x9), region = 108 }
 0x6a5   :  { %1704 = vsyncpa [#allocation4], 1 }
 0x6a6   :  { %1706 = vsyncpa [#allocation4 + $0x1], 1 }
 0x6a7   :  { %1707 = vsyncpa [#allocation7], 1 }
 0x6a8   :  { %1708 = vsyncpa [#allocation5], 1 }
 0x6a9   :  { %1710 = vsyncpa [#allocation5 + $0x1], 1 }

</bundles_post_ra>
